<compile_context>
chip_gen: v7x
topology: tpu7x:2x2x1
jax: 0.10.0
libtpu: 0.0.40
codegen_flags: <defaults>
</compile_context>

<pallas_src>
import functools

import jax
import jax.numpy as jnp
from jax.experimental import pallas as pl
from jax.experimental.pallas import tpu as pltpu


def _patch_proj_kernel(patch_ref, w_ref, b_ref, pos_ref, o_ref):
    # patch_ref: (tM, K)  bf16   flattened patches (M = B * num_patches)
    # w_ref:     (E, K)   bf16   conv weight, NOT transposed
    # b_ref:     (1, E)   f32    conv bias
    # pos_ref:   (tM, E)  f32    positional-embedding body rows matching this M tile
    # o_ref:     (tM, E)  f32
    proj = jax.lax.dot_general(
        patch_ref[...], w_ref[...],
        dimension_numbers=(((1,), (1,)), ((), ())),   # contract K vs K -> (tM, E) on MXU
        preferred_element_type=jnp.float32)
    o_ref[...] = (proj + b_ref[...] + pos_ref[...]).astype(o_ref.dtype)


def _choose_tile_m(M, P, B, K, E, target=512):
    """Pick an M tile: big enough to fill the MXU / amortize per-step overhead, small enough
    that double-buffered blocks stay well inside VMEM (conservative for v7x's 64 MiB)."""
    per_row = 2 * K * 2 + 2 * E * 4 + E * 4        # patches(bf16,2buf) + out(f32,2buf) + pos(f32)
    budget = 16 * 1024 * 1024
    cap = max(8, min(target, budget // max(per_row, 1)))
    if P <= cap:
        nb = max(1, min(B, cap // P))               # whole batches per tile
        while B % nb:                               # grid must cover M exactly
            nb -= 1
        tm = nb * P
    else:
        tm = 0
        for t in range(cap - cap % 8, 7, -8):       # largest 8-aligned divisor of P <= cap
            if P % t == 0:
                tm = t
                break
        if tm == 0:
            tm = P  # TODO(synk): pathological P (not 8-aligned and > cap) falls back below
    if tm % 8 and tm != M:                          # (8,128) rule: rows % 8 == 0 or full extent
        tm = M
    return tm


@functools.partial(jax.jit, static_argnames=("patch_size",))
def position_encoding_forward(x, conv_w, conv_b, cls_token, pos_embed, patch_size):
    """x: (B, C, D, H, W) float32.  Returns (B, num_patches + 1, embed_dim) float32."""
    B, C, D, H, W = x.shape
    p = patch_size
    E = conv_w.shape[0]
    nd, nh, nw = D // p, H // p, W // p
    P = nd * nh * nw
    K = C * p * p * p
    M = B * P

    # --- wrapper glue: extract non-overlapping patches (Conv3d with kernel == stride) ---
    # cast to bf16 FIRST so the materialized transpose copy moves half the bytes
    xb = x.astype(jnp.bfloat16)
    xp = xb.reshape(B, C, nd, p, nh, p, nw, p)
    xp = xp.transpose(0, 2, 4, 6, 1, 3, 5, 7)        # (B, nd, nh, nw, C, p, p, p)
    patches = xp.reshape(M, K)                       # (B*P, K) bf16

    w = conv_w.reshape(E, K).astype(jnp.bfloat16)    # keep (E, K): no transpose HBM pass
    b = conv_b.reshape(1, E).astype(jnp.float32)
    pos = pos_embed.reshape(P + 1, E).astype(jnp.float32)
    pos_cls = pos[0, :]                              # (E,)  cls-row positional embedding
    pos_body = pos[1:, :]                            # (P, E) aligned body rows

    tm = _choose_tile_m(M, P, B, K, E)
    grid_m = M // tm

    if tm >= P:
        # tile covers tm // P whole batches: pre-tile the (small) pos body once and reuse
        pos_arg = jnp.tile(pos_body, (tm // P, 1))   # (tm, E)
        pos_map = lambda mi: (0, 0)
    else:
        # tm divides P: select the pos block matching this tile's position within a batch
        p_tiles = P // tm
        pos_arg = pos_body
        pos_map = lambda mi: (mi % p_tiles, 0)

    vmem_est = (2 * tm * K * 2 + 2 * tm * E * 4 + 2 * tm * E * 4
                + E * K * 2 + E * 4)
    vmem_limit = int(min(max(4 * vmem_est, 8 * 1024 * 1024), 48 * 1024 * 1024))

    body = pl.pallas_call(
        _patch_proj_kernel,
        out_shape=jax.ShapeDtypeStruct((M, E), jnp.float32),
        grid_spec=pltpu.PrefetchScalarGridSpec(
            num_scalar_prefetch=0,
            grid=(grid_m,),
            in_specs=[
                pl.BlockSpec((tm, K), lambda mi: (mi, 0)),   # flattened patch rows
                pl.BlockSpec((E, K), lambda mi: (0, 0)),     # conv weight (E, K)
                pl.BlockSpec((1, E), lambda mi: (0, 0)),     # bias
                pl.BlockSpec((tm, E), pos_map),              # pos-embed body rows
            ],
            out_specs=pl.BlockSpec((tm, E), lambda mi: (mi, 0)),
        ),
        compiler_params=pltpu.CompilerParams(
            dimension_semantics=("parallel",),
            vmem_limit_bytes=vmem_limit),
    )(patches, w, b, pos_arg)

    # cls row = cls_token + pos_embed[:, 0]: trivial broadcast handled outside the kernel
    cls = cls_token.reshape(E).astype(jnp.float32)
    head = jnp.broadcast_to((cls + pos_cls).reshape(1, 1, E), (B, 1, E))
    out = jnp.concatenate([head, body.reshape(B, P, E)], axis=1)
    return out


def reference_forward(x, conv_w, conv_b, cls_token, pos_embed, patch_size):
    """Pure-JAX reference reproducing the PyTorch forward (eval mode)."""
    B = x.shape[0]
    E = conv_w.shape[0]
    y = jax.lax.conv_general_dilated(
        x, conv_w,
        window_strides=(patch_size,) * 3,
        padding="VALID",
        dimension_numbers=("NCDHW", "OIDHW", "NCDHW"),
    ) + conv_b.reshape(1, E, 1, 1, 1)
    y = y.reshape(B, E, -1).transpose(0, 2, 1)        # flatten(2).transpose(1, 2)
    cls = jnp.broadcast_to(cls_token, (B, 1, E))
    y = jnp.concatenate([cls, y], axis=1)
    y = y + pos_embed
    return y


if __name__ == "__main__":
    # Small config consistent with the module: img_dim=3, img_size=(8,8,8), patch_size=4
    # -> num_patches = (8//4)**3 = 8; in_channel=1; embed_dim=32; batch=2.
    B, C = 2, 1
    D = H = W = 8
    patch_size = 4
    E = 32
    P = (D // patch_size) * (H // patch_size) * (W // patch_size)

    key = jax.random.PRNGKey(0)
    kx, kw, kb, kc, kp = jax.random.split(key, 5)
    x = jax.random.normal(kx, (B, C, D, H, W), dtype=jnp.float32)
    conv_w = jax.random.normal(kw, (E, C, patch_size, patch_size, patch_size),
                               dtype=jnp.float32) * 0.05
    conv_b = jax.random.normal(kb, (E,), dtype=jnp.float32) * 0.05
    # PyTorch inits cls_token / pos_embed to zeros; use non-zero values so the add path
    # is actually exercised.
    cls_token = jax.random.normal(kc, (1, 1, E), dtype=jnp.float32) * 0.02
    pos_embed = jax.random.normal(kp, (1, P + 1, E), dtype=jnp.float32) * 0.02

    out = position_encoding_forward(x, conv_w, conv_b, cls_token, pos_embed,
                                    patch_size=patch_size)
    out = jax.block_until_ready(out)
    assert out.shape == (B, P + 1, E), out.shape

    # Tight check: reference computed with the same bf16 operand rounding the kernel uses.
    ref_bf16 = reference_forward(
        x.astype(jnp.bfloat16).astype(jnp.float32),
        conv_w.astype(jnp.bfloat16).astype(jnp.float32),
        conv_b, cls_token, pos_embed, patch_size)
    err_bf16 = float(jnp.max(jnp.abs(out - ref_bf16)))
    assert jnp.allclose(out, ref_bf16, atol=1e-4, rtol=1e-4), err_bf16

    # End-to-end check against the full-f32 reference (tolerance for bf16 operand stream).
    ref_f32 = reference_forward(x, conv_w, conv_b, cls_token, pos_embed, patch_size)
    err_f32 = float(jnp.max(jnp.abs(out - ref_f32)))
    assert jnp.allclose(out, ref_f32, atol=1e-2, rtol=1e-2), err_f32

    print("KERNEL_OK")
</pallas_src>

<mosaic_0001>
module attributes {stable_mosaic.version = 11 : i64} {
  func.func @_patch_proj_kernel(%arg0: i32, %arg1: memref<16x64xbf16, #tpu.memory_space<vmem>>, %arg2: memref<32x64xbf16, #tpu.memory_space<vmem>>, %arg3: memref<1x32xf32, #tpu.memory_space<vmem>>, %arg4: memref<16x32xf32, #tpu.memory_space<vmem>>, %arg5: memref<16x32xf32, #tpu.memory_space<vmem>>) attributes {dimension_semantics = [#tpu.dimension_semantics<parallel>], iteration_bounds = array<i64: 1>, scalar_prefetch = 0 : i64, scratch_operands = 0 : i64, tpu.core_type = #tpu.core_type<tc>, window_params = [{transform_indices = @transform_0, window_bounds = array<i64: 16, 64>}, {pipeline_mode = #tpu.pipeline_mode<synchronous>, transform_indices = @transform_1, window_bounds = array<i64: 32, 64>}, {pipeline_mode = #tpu.pipeline_mode<synchronous>, transform_indices = @transform_2, window_bounds = array<i64: 1, 32>}, {pipeline_mode = #tpu.pipeline_mode<synchronous>, transform_indices = @transform_3, window_bounds = array<i64: 16, 32>}, {transform_indices = @transform_4, window_bounds = array<i64: 16, 32>}]} {
    %c0 = arith.constant 0 : index
    %c0_0 = arith.constant 0 : index
    %0 = vector.load %arg1[%c0, %c0_0] : memref<16x64xbf16, #tpu.memory_space<vmem>>, vector<16x64xbf16>
    %c0_1 = arith.constant 0 : index
    %c0_2 = arith.constant 0 : index
    %1 = vector.load %arg2[%c0_1, %c0_2] : memref<32x64xbf16, #tpu.memory_space<vmem>>, vector<32x64xbf16>
    %cst = arith.constant dense<0.000000e+00> : vector<16x32xf32>
    %2 = tpu.matmul %0, %1, %cst {dimension_numbers = #tpu.dot_dimension_numbers<[1], [1], [0], [0], [0, 0, 1, 0], [], []>} : vector<16x64xbf16>, vector<32x64xbf16>, vector<16x32xf32> -> vector<16x32xf32>
    %c0_3 = arith.constant 0 : index
    %c0_4 = arith.constant 0 : index
    %3 = vector.load %arg3[%c0_3, %c0_4] : memref<1x32xf32, #tpu.memory_space<vmem>>, vector<1x32xf32>
    %4 = vector.broadcast %3 : vector<1x32xf32> to vector<16x32xf32>
    %5 = arith.addf %2, %4 : vector<16x32xf32>
    %c0_5 = arith.constant 0 : index
    %c0_6 = arith.constant 0 : index
    %6 = vector.load %arg4[%c0_5, %c0_6] : memref<16x32xf32, #tpu.memory_space<vmem>>, vector<16x32xf32>
    %7 = arith.addf %5, %6 : vector<16x32xf32>
    %c0_7 = arith.constant 0 : index
    %c0_8 = arith.constant 0 : index
    %8 = vector.load %arg5[%c0_7, %c0_8] : memref<16x32xf32, #tpu.memory_space<vmem>>, vector<16x32xf32>
    tpu.vector_store %arg5[%c0_7, %c0_8], %7 {strides = array<i32>} : memref<16x32xf32, #tpu.memory_space<vmem>>, vector<16x32xf32>,
    return
  }
  func.func @transform_0(%arg0: i32) -> (i32, i32) {
    %c0_i32 = arith.constant 0 : i32
    %c0_i32_0 = arith.constant 0 : i32
    return %arg0, %c0_i32 : i32, i32
  }
  func.func @transform_1(%arg0: i32) -> (i32, i32) {
    %c0_i32 = arith.constant 0 : i32
    %c0_i32_0 = arith.constant 0 : i32
    %c0_i32_1 = arith.constant 0 : i32
    return %c0_i32, %c0_i32_0 : i32, i32
  }
  func.func @transform_2(%arg0: i32) -> (i32, i32) {
    %c0_i32 = arith.constant 0 : i32
    %c0_i32_0 = arith.constant 0 : i32
    %c0_i32_1 = arith.constant 0 : i32
    return %c0_i32, %c0_i32_0 : i32, i32
  }
  func.func @transform_3(%arg0: i32) -> (i32, i32) {
    %c0_i32 = arith.constant 0 : i32
    %c0_i32_0 = arith.constant 0 : i32
    %c0_i32_1 = arith.constant 0 : i32
    return %c0_i32, %c0_i32_0 : i32, i32
  }
  func.func @transform_4(%arg0: i32) -> (i32, i32) {
    %c0_i32 = arith.constant 0 : i32
    %c0_i32_0 = arith.constant 0 : i32
    return %arg0, %c0_i32 : i32, i32
  }
}

</mosaic_0001>

<bundles_post_ra>
// kernel: position_encoding_forward.1
= control target key start
LH: loop header
LB: loop body
LE: loop exit
PB: predicated region body
PF: predicated region fallthrough
CT: control target
= control target key end

     0   :  { %vm46_vm0 = vcmask 523264   ;;  %v129_v0 = vmov 0.0   ;;  %vm130_vm1 = vmmov 0   ;;  %vm101_vm2 = vcmask 261120   ;;  %s180_s1 = inlined_call_operand.vmem [shape: bf16[32,64], index: 1, kind: input, shape index: {}]   ;;  %s181_s0 = inlined_call_operand.vmem [shape: bf16[16,64], index: 0, kind: input, shape index: {}]   ;;  %s182_s2 = inlined_call_operand.vmem [shape: f32[1,32], index: 2, kind: input, shape index: {}]   ;;  %s183_s3 = inlined_call_operand.vmem [shape: f32[16,32], index: 3, kind: input, shape index: {}]   ;;  %s184_s4 = inlined_call_operand.vmem [shape: f32[16,32], index: 4, kind: output, shape index: {}]  }
   0x1   :  { %116 = vmatprep.subr.bf16.mxu0 %v129_v0  ;;  %v126_v1 = vld [vmem:[%s180_s1] sm:$0xff]   ;;  %120 = vmatprep.mubr.msk.bf16.mxu0 %vm130_vm1, %v129_v0  ;;  %v127_v3 = vld [vmem:[%s180_s1 + $0x8] sm:$0xff]  }
   0x2   :  { %v51_v2 = vsel %vm46_vm0, %v126_v1, 0  ;;  %v54_v4 = vsel %vm46_vm0, %v127_v3, 0  ;;  %v128_v5 = vld [vmem:[%s181_s0] sm:$0xff]   ;;  %v98_v12 = vld [vmem:[%s183_s3 + $0x8] sm:$0xff] }
   0x3   :  { %117 = vmatpush3.bf16.xpose.msra.mxu0 %v51_v2  ;;  %v108_v6 = vld [vmem:[%s182_s2] ss:$0 sm:$0xff] }
   0x4   :  { %118 = vmatprep.subr.bf16.mxu0 %v129_v0  ;;  %v97_v8 = vld [vmem:[%s183_s3] sm:$0xff] }
   0xb   :  { %119 = vmatpush3.bf16.xpose.msra.mxu0 %v54_v4 }
  0x12   :  { %121 = vmatmul.mubr.msk.bf16.vlgmr.msra.gmra.mrb[0].mxu0 %vm46_vm0, %v128_v5 }
  0xe5   :  { %v90_v7 = vpop.f32.mrb[0].mxu0 }
  0xe6   :  { %v91_v9 = vadd.f32 %v108_v6, %v90_v7  ;;  %v122_v10 = vpop.f32.mrb[1].mxu0 }
  0xe7   :  { %v93_v11 = vpop.f32.mrb[2].mxu0 }
  0xe8   :  { %v99_v13 = vadd.f32 %v97_v8, %v91_v9  ;;  %v94_v14 = vadd.f32 %v108_v6, %v93_v11  ;;  %v123_v15 = vpop.f32.mrb[3].mxu0 }
  0xea   :  { %102 = vst.msk [vmem:[%s184_s4] sm:$0xff] %vm101_vm2, %v99_v13  ;;  %v100_v16 = vadd.f32 %v98_v12, %v94_v14 }
  0xec   :  { %103 = vst.msk [vmem:[%s184_s4 + $0x8] sm:$0xff] %vm101_vm2, %v100_v16 }

</bundles_post_ra>
